<compile_context>
chip_gen: v7x
topology: tpu7x:2x2x1
jax: 0.10.0
libtpu: 0.0.40
codegen_flags: <defaults>
</compile_context>

<pallas_src>
import functools

import jax
import jax.numpy as jnp
from jax import lax
from jax.experimental import pallas as pl
from jax.experimental.pallas import tpu as pltpu


def _cls_head_kernel(x_ref, w_ref, b_ref, o_ref, acc_ref, *,
                     inv_hw, lane, hwt, hw_total, n_hw_tiles):
    """Grid = (batch_tiles, hw_tiles); the HW axis (last) is the reduction axis.

    Per step: lane-aligned chunked accumulation (VPU adds only) of the
    (nt, C, hwt) x tile into the f32 (nt, C, lane) scratch.  On the last HW
    tile: one cross-lane reduce, scale by 1/(H*W), tiny resident-weight matmul,
    bias add, lane-dense store.
    """
    hw_idx = pl.program_id(1)

    @pl.when(hw_idx == 0)
    def _init():
        acc_ref[...] = jnp.zeros_like(acc_ref)

    n_chunks = hwt // lane                      # static; hwt is a multiple of lane

    def accumulate(tile_valid):
        # tile_valid: static count of in-bounds lanes in this HW tile (<= hwt).
        for k in range(n_chunks):
            start = k * lane
            if start >= tile_valid:             # chunk fully out of bounds: static skip
                break
            chunk = x_ref[:, :, start:start + lane].astype(jnp.float32)
            valid = tile_valid - start
            if valid < lane:                    # ragged chunk: mask OOB lanes (static rem)
                lane_ids = lax.broadcasted_iota(jnp.int32, chunk.shape, 2)
                chunk = jnp.where(lane_ids < valid, chunk, 0.0)
            acc_ref[...] += chunk               # pure VPU add; no per-step XLU work

    rem = hw_total - (n_hw_tiles - 1) * hwt     # valid lanes in the last HW tile (static)
    if rem == hwt:                              # HW divides evenly: every tile is full
        accumulate(hwt)
    elif n_hw_tiles == 1:                       # single (ragged) tile
        accumulate(rem)
    else:
        @pl.when(hw_idx < n_hw_tiles - 1)
        def _full_tiles():
            accumulate(hwt)

        @pl.when(hw_idx == n_hw_tiles - 1)
        def _ragged_tile():
            accumulate(rem)

    # Epilogue: once per batch tile, on the last HW tile only.
    @pl.when(hw_idx == n_hw_tiles - 1)
    def _finalize():
        pooled = jnp.sum(acc_ref[...], axis=-1) * inv_hw        # (nt, C) f32, one XLU pass
        pooled = pooled.astype(w_ref.dtype)                     # native-dtype MXU path
        logits = jnp.dot(pooled, w_ref[...],
                         preferred_element_type=jnp.float32)    # (nt, P) f32 accumulate
        logits = logits + b_ref[...]                            # (1, P) f32 bias
        o_ref[...] = logits.astype(o_ref.dtype)


def _pick_batch_tile(N, C, x_itemsize):
    """Largest nt dividing N such that the f32 (nt, C, 128) accumulator and the
    minimal (nt, C, 128) x block stay within a few MiB, nt is N or a multiple of
    8 (so the (nt, P) output block obeys the (8,128) tiling rule), and -- for
    larger N -- at least 2 batch tiles remain (v7x megacore sharding)."""
    acc_cap = max(1, (8 << 20) // (C * 128 * 4))
    blk_cap = max(1, (4 << 20) // (C * 128 * x_itemsize))
    cap = min(N, acc_cap, blk_cap)
    if N >= 16:
        cap = min(cap, N // 2)                  # leave work for the 2nd TensorCore (v7x)
    for d in range(cap, 0, -1):
        if N % d == 0 and (d == N or d % 8 == 0):
            return d
    return N


def _pick_hw_tile(HW, nt, C, x_itemsize, max_chunks=8):
    """HW tile: full extent when HW <= 128, otherwise a multiple of 128 (<= HW)
    sized so the per-step x block is a few MiB, with a short unrolled chunk loop."""
    if HW <= 128:
        return HW
    target = 4 << 20
    chunks = max(1, target // (nt * C * 128 * x_itemsize))
    chunks = int(min(chunks, max_chunks, HW // 128))
    return chunks * 128


def base_cls_head_forward(x, weight, bias, *, batch_tile=None, hw_tile=None,
                          out_dtype=None, interpret=False):
    """Forward of BaseClsHead: global average pool (H,W) -> Linear.

    x:      (N, C, H, W)              NCHW feature map
    weight: (num_classes, in_plane)   nn.Linear weight
    bias:   (num_classes,)            nn.Linear bias
    returns logits of shape (N, num_classes)
    """
    N, C, H, W = x.shape
    num_classes, in_plane = weight.shape
    assert in_plane == C, "Linear in_plane must match channel count"
    HW = H * W
    x_itemsize = jnp.dtype(x.dtype).itemsize
    if out_dtype is None:
        out_dtype = jnp.result_type(x.dtype, weight.dtype)

    # ---- lane-dense class dim: pad to a multiple of 128, zeros sliced off later.
    P = max(128, ((num_classes + 127) // 128) * 128)
    w_t = jnp.transpose(weight)                          # (C, num_classes), caller dtype
    if P != num_classes:
        w_t = jnp.pad(w_t, ((0, 0), (0, P - num_classes)))
        b_pad = jnp.pad(bias, (0, P - num_classes))
    else:
        b_pad = bias
    b_pad = jnp.reshape(b_pad, (1, P)).astype(jnp.float32)

    # ---- flatten spatial dims (free reshape; NO pad / transpose / extra HBM pass)
    x_flat = jnp.reshape(x, (N, C, HW))

    # ---- tiling
    nt = batch_tile if batch_tile is not None else _pick_batch_tile(N, C, x_itemsize)
    assert N % nt == 0, "batch_tile must divide N"
    assert nt == N or nt % 8 == 0, "batch_tile must be N or a multiple of 8"

    if HW <= 128:
        hwt = HW
    else:
        hwt = hw_tile if hw_tile is not None else _pick_hw_tile(HW, nt, C, x_itemsize)
        hwt = max(128, (min(hwt, HW) // 128) * 128)      # multiple of 128, <= HW
    lane = min(hwt, 128)
    n_hw_tiles = pl.cdiv(HW, hwt)
    grid = (N // nt, n_hw_tiles)

    kernel = functools.partial(
        _cls_head_kernel, inv_hw=float(1.0 / HW), lane=lane, hwt=hwt,
        hw_total=HW, n_hw_tiles=n_hw_tiles)

    # VMEM budget: double-buffered x/out blocks + resident weight/bias + accumulator.
    est = (2 * nt * C * hwt * x_itemsize
           + 2 * nt * P * jnp.dtype(out_dtype).itemsize
           + 2 * (C * P * jnp.dtype(w_t.dtype).itemsize + P * 4)
           + nt * C * lane * 4)
    vmem_limit = int(min(56 << 20, max(32 << 20, 2 * est)))

    out_padded = pl.pallas_call(
        kernel,
        out_shape=jax.ShapeDtypeStruct((N, P), out_dtype),
        grid_spec=pltpu.PrefetchScalarGridSpec(
            num_scalar_prefetch=0,
            grid=grid,
            in_specs=[
                # x: stream one (nt, C, hwt) tile per step (single HBM pass over x)
                pl.BlockSpec((nt, C, hwt), lambda i, j: (i, 0, j)),
                # weight: constant block index -> stays resident in VMEM
                pl.BlockSpec((C, P), lambda i, j: (0, 0)),
                # bias: resident (1, P) f32
                pl.BlockSpec((1, P), lambda i, j: (0, 0)),
            ],
            # same output block across the HW axis -> accumulator / finalize pattern
            out_specs=pl.BlockSpec((nt, P), lambda i, j: (i, 0)),
            scratch_shapes=[pltpu.VMEM((nt, C, lane), jnp.float32)],
        ),
        compiler_params=pltpu.CompilerParams(
            dimension_semantics=("parallel", "arbitrary"),
            vmem_limit_bytes=vmem_limit,
        ),
        interpret=interpret,
    )(x_flat, w_t, b_pad)

    return out_padded[:, :num_classes]


# TODO(synk): MSRA weight init and dict-input feature selection from the original
# module are host/config-side concerns; weights are taken as inputs here.

if __name__ == "__main__":
    key = jax.random.PRNGKey(0)
    kx, kw, kb = jax.random.split(key, 3)

    # Small shapes consistent with the module: NCHW features + Linear head.
    N, C, H, W = 2, 4, 16, 16
    num_classes = 10

    x = jax.random.normal(kx, (N, C, H, W), dtype=jnp.float32)
    weight = jax.random.normal(kw, (num_classes, C), dtype=jnp.float32) * 0.1
    bias = jax.random.normal(kb, (num_classes,), dtype=jnp.float32) * 0.1

    def ref_head(xx):
        return xx.mean(axis=(2, 3)) @ weight.T + bias

    # 1) hw_tile=128 on HW=256 -> two full HW tiles (multi-step chunked accumulation).
    logits = jax.block_until_ready(base_cls_head_forward(x, weight, bias, hw_tile=128))
    assert logits.shape == (N, num_classes)
    assert jnp.allclose(logits, ref_head(x), atol=1e-4, rtol=1e-4)

    # 2) Default heuristics (single HW tile covering all 256 lanes).
    logits_d = jax.block_until_ready(base_cls_head_forward(x, weight, bias))
    assert jnp.allclose(logits_d, ref_head(x), atol=1e-4, rtol=1e-4)

    # 3) Ragged spatial extent (H*W=169): last 128-lane HW tile is partially OOB and
    #    masked in-kernel (no wrapper-side pad / extra HBM pass).
    x2 = jax.random.normal(kx, (N, C, 13, 13), dtype=jnp.float32)
    logits2 = jax.block_until_ready(base_cls_head_forward(x2, weight, bias, hw_tile=128))
    assert jnp.allclose(logits2, ref_head(x2), atol=1e-4, rtol=1e-4)

    print("KERNEL_OK")
</pallas_src>

<mosaic_0001>
module attributes {stable_mosaic.version = 11 : i64} {
  func.func @_cls_head_kernel(%arg0: i32, %arg1: i32, %arg2: memref<2x4x128xf32, #tpu.memory_space<vmem>>, %arg3: memref<4x128xf32, #tpu.memory_space<vmem>>, %arg4: memref<1x128xf32, #tpu.memory_space<vmem>>, %arg5: memref<2x128xf32, #tpu.memory_space<vmem>>, %arg6: memref<2x4x128xf32, #tpu.memory_space<vmem>>) attributes {dimension_semantics = [#tpu.dimension_semantics<parallel>, #tpu.dimension_semantics<arbitrary>], iteration_bounds = array<i64: 1, 2>, scalar_prefetch = 0 : i64, scratch_operands = 1 : i64, tpu.core_type = #tpu.core_type<tc>, window_params = [{transform_indices = @transform_0, window_bounds = array<i64: 2, 4, 128>}, {pipeline_mode = #tpu.pipeline_mode<synchronous>, transform_indices = @transform_1, window_bounds = array<i64: 4, 128>}, {pipeline_mode = #tpu.pipeline_mode<synchronous>, transform_indices = @transform_2, window_bounds = array<i64: 1, 128>}, {transform_indices = @transform_3, window_bounds = array<i64: 2, 128>}]} {
    %c0_i32 = arith.constant 0 : i32
    %0 = arith.cmpi eq, %arg1, %c0_i32 : i32
    %1 = arith.extui %0 : i1 to i32
    %c0_i32_0 = arith.constant 0 : i32
    %2 = arith.cmpi ne, %1, %c0_i32_0 : i32
    scf.if %2 {
      %cst = arith.constant 0.000000e+00 : f32
      %10 = vector.broadcast %cst : f32 to vector<2x4x128xf32>
      %c0_10 = arith.constant 0 : index
      %c0_11 = arith.constant 0 : index
      %c0_12 = arith.constant 0 : index
      %11 = vector.load %arg6[%c0_10, %c0_11, %c0_12] : memref<2x4x128xf32, #tpu.memory_space<vmem>>, vector<2x4x128xf32>
      tpu.vector_store %arg6[%c0_10, %c0_11, %c0_12], %10 {strides = array<i32>} : memref<2x4x128xf32, #tpu.memory_space<vmem>>, vector<2x4x128xf32>,
    } else {
    }
    %c0 = arith.constant 0 : index
    %c0_1 = arith.constant 0 : index
    %c0_2 = arith.constant 0 : index
    %3 = vector.load %arg2[%c0, %c0_1, %c0_2] : memref<2x4x128xf32, #tpu.memory_space<vmem>>, vector<2x4x128xf32>
    %c0_3 = arith.constant 0 : index
    %c0_4 = arith.constant 0 : index
    %c0_5 = arith.constant 0 : index
    %4 = vector.load %arg6[%c0_3, %c0_4, %c0_5] : memref<2x4x128xf32, #tpu.memory_space<vmem>>, vector<2x4x128xf32>
    %5 = arith.addf %4, %3 : vector<2x4x128xf32>
    %c0_6 = arith.constant 0 : index
    %c0_7 = arith.constant 0 : index
    %c0_8 = arith.constant 0 : index
    %6 = vector.load %arg6[%c0_6, %c0_7, %c0_8] : memref<2x4x128xf32, #tpu.memory_space<vmem>>, vector<2x4x128xf32>
    tpu.vector_store %arg6[%c0_6, %c0_7, %c0_8], %5 {strides = array<i32>} : memref<2x4x128xf32, #tpu.memory_space<vmem>>, vector<2x4x128xf32>,
    %c1_i32 = arith.constant 1 : i32
    %7 = arith.cmpi eq, %arg1, %c1_i32 : i32
    %8 = arith.extui %7 : i1 to i32
    %c0_i32_9 = arith.constant 0 : i32
    %9 = arith.cmpi ne, %8, %c0_i32_9 : i32
    scf.if %9 {
      %c0_10 = arith.constant 0 : index
      %c0_11 = arith.constant 0 : index
      %c0_12 = arith.constant 0 : index
      %10 = vector.load %arg6[%c0_10, %c0_11, %c0_12] : memref<2x4x128xf32, #tpu.memory_space<vmem>>, vector<2x4x128xf32>
      %cst = arith.constant dense<0.000000e+00> : vector<2x4xf32>
      %11 = vector.multi_reduction <add>, %10, %cst [2] : vector<2x4x128xf32> to vector<2x4xf32>
      %cst_13 = arith.constant 3.906250e-03 : f32
      %12 = vector.broadcast %cst_13 : f32 to vector<2x4xf32>
      %13 = arith.mulf %11, %12 : vector<2x4xf32>
      %c0_14 = arith.constant 0 : index
      %c0_15 = arith.constant 0 : index
      %14 = vector.load %arg3[%c0_14, %c0_15] : memref<4x128xf32, #tpu.memory_space<vmem>>, vector<4x128xf32>
      %cst_16 = arith.constant dense<0.000000e+00> : vector<2x128xf32>
      %15 = tpu.matmul %13, %14, %cst_16 {dimension_numbers = #tpu.dot_dimension_numbers<[1], [0], [0], [1], [0, 0, 1, 1], [], []>} : vector<2x4xf32>, vector<4x128xf32>, vector<2x128xf32> -> vector<2x128xf32>
      %c0_17 = arith.constant 0 : index
      %c0_18 = arith.constant 0 : index
      %16 = vector.load %arg4[%c0_17, %c0_18] : memref<1x128xf32, #tpu.memory_space<vmem>>, vector<1x128xf32>
      %17 = vector.broadcast %16 : vector<1x128xf32> to vector<2x128xf32>
      %18 = arith.addf %15, %17 : vector<2x128xf32>
      %c0_19 = arith.constant 0 : index
      %c0_20 = arith.constant 0 : index
      %19 = vector.load %arg5[%c0_19, %c0_20] : memref<2x128xf32, #tpu.memory_space<vmem>>, vector<2x128xf32>
      tpu.vector_store %arg5[%c0_19, %c0_20], %18 {strides = array<i32>} : memref<2x128xf32, #tpu.memory_space<vmem>>, vector<2x128xf32>,
    } else {
    }
    return
  }
  func.func @transform_0(%arg0: i32, %arg1: i32) -> (i32, i32, i32) {
    %c0_i32 = arith.constant 0 : i32
    %c0_i32_0 = arith.constant 0 : i32
    return %arg0, %c0_i32, %arg1 : i32, i32, i32
  }
  func.func @transform_1(%arg0: i32, %arg1: i32) -> (i32, i32) {
    %c0_i32 = arith.constant 0 : i32
    %c0_i32_0 = arith.constant 0 : i32
    %c0_i32_1 = arith.constant 0 : i32
    return %c0_i32, %c0_i32_0 : i32, i32
  }
  func.func @transform_2(%arg0: i32, %arg1: i32) -> (i32, i32) {
    %c0_i32 = arith.constant 0 : i32
    %c0_i32_0 = arith.constant 0 : i32
    %c0_i32_1 = arith.constant 0 : i32
    return %c0_i32, %c0_i32_0 : i32, i32
  }
  func.func @transform_3(%arg0: i32, %arg1: i32) -> (i32, i32) {
    %c0_i32 = arith.constant 0 : i32
    %c0_i32_0 = arith.constant 0 : i32
    return %arg0, %c0_i32 : i32, i32
  }
}

</mosaic_0001>

<bundles_post_ra>
// kernel: tpu_custom_call.1
= control target key start
LH: loop header
LB: loop body
LE: loop exit
PB: predicated region body
PF: predicated region fallthrough
CT: control target
= control target key end

     0   :  { %8 = vsyncpa [#allocation4], 0  ;;  %s893_s0 = inlined_call_operand.hbm [shape: f32[2,4,256], index: 0, kind: input, shape index: {}]   ;;  %s894_s1 = inlined_call_operand.hbm [shape: f32[4,128], index: 1, kind: input, shape index: {}]   ;;  %s895_s2 = inlined_call_operand.vmem [shape: f32[1,128], index: 2, kind: input, shape index: {}]   ;;  %s896_s3 = inlined_call_operand.hbm [shape: f32[2,128], index: 3, kind: output, shape index: {}]  }
   0x1   :  { %10 = vsyncpa [#allocation4 + $0x1], 0 }
   0x2   :  { %11 = vsyncpa [#allocation7], 0 }
   0x3   :  { %12 = vsyncpa [#allocation5], 0  ;;  %s699_s12 = smov 0   ;;  %s701_s13 = smov 0  }
   0x4   :  { %s703_s14 = smov 0   ;;  %s705_s15 = smov 0  }
   0x5   :  { %s707_s16 = smov 0   ;;  %s709_s17 = smov 0  }
   0x6 LB: > { %s422_s18 = sadd.s32 4294967295, %s668_s17   ;;  %s39_s19 = sadd.s32 1, %s656_s14  ;;  %s668_s17 = sphi %s709_s17, %s18_s17   ;;  %s664_s16 = sphi %s707_s16, %s916_s16   ;;  %s660_s15 = sphi %s705_s15, %s915_s15   ;;  %s656_s14 = sphi %s703_s14, %s914_s14   ;;  %s652_s13 = sphi %s701_s13, %s913_s13   ;;  %s648_s12 = sphi %s699_s12, %s912_s12  }
   0x7   : > { %p46_p0 = scmp.ne.s32.totalorder %s656_s14, %s652_s13  ;;  %p47_p1 = scmp.eq.s32.totalorder %s668_s17, 0 }
   0x8   : > { %p52_p2 = scmp.ne.s32.totalorder %s652_s13, %s648_s12  ;;  %p735_p3 = scmp.eq.s32.totalorder %s422_s18, 0 }
   0x9   : > { %p48_p4 = por %p47_p1, %p46_p0  ;;  %p423_p5 = scmp.ge.s32.totalorder %s668_s17, 1 }
   0xa   : > { %s902_s20 = scalar_select %p735_p3, 1, 0 }
   0xb   : > { %p742_p6 = por %p735_p3, %p52_p2  ;;  %p131_p7 = scmp.lt.s32.totalorder %s668_s17, 3 }
   0xc   : > { %s670_s23 = smov [#allocation6]   ;;  %p466_p10 = scmp.lt.s32.totalorder %s668_s17, 2 }
   0xd   : > { %s903_s21 = scalar_select %p742_p6, 1, 0 }
   0xe   : > { %p747_p8 = pnand %p423_p5, %p131_p7  ;;  %s144_s24 = sshll.u32 %s670_s23, 4  ;;  %s145_s24 = int_to_ptr.vmem [resolvable:$true] %s144_s24 }
   0xf   : > { %s158_s25 = sand.u32 1, %s656_s14   ;;  %p761_p12 = pnand %p466_p10, %p48_p4 }
  0x10   : > { %s904_s22 = scalar_select %p747_p8, 1, 0 }
  0x11   : > { %p457_p9 = pneg %p747_p8  ;;  %s526_s30 = scalar_lea.hbm %s894_s1, 64 }
  0x12   : > { %s906_s27 = scalar_select %p761_p12, 1, 0 }
  0x13   : > { %p757_p11 = pnand %p457_p9, %p735_p3  ;;  %p527_p13 = scmp.ne.s32.totalorder %s894_s1, %s526_s30 }
  0x14   : > { %p533_p5 = scmp.lt.u32.totalorder %s526_s30, %s894_s1 }
  0x15   : > { %p528_p0 = pneg %p757_p11 }
  0x17   : > { %p529_p1 = pnand %p528_p0, %p527_p13 }
  0x19   : > { %p530_p2 = pneg %p529_p1 }
  0x1b   : > { %p535_p4 = pnand %p533_p5, %p530_p2 }
  0x1d   : > { %538 = shalt.err (!%p535_p4)
}
  0x1e   : > { %s539_s8 = scalar_lea.vmem %s145_s24, 64  ;;  %p547_p3 = scmp.lt.s32.totalorder %s145_s24, %s145_s24 }
  0x1f   : > { %p540_p7 = scmp.ne.s32.totalorder %s145_s24, %s539_s8  ;;  %p548_p6 = scmp.lt.s32.totalorder %s539_s8, %s539_s8 }
  0x21   : > { %p542_p9 = pnand %p540_p7, %p528_p0  ;;  %p549_p8 = por %p548_p6, %p547_p3 }
  0x23   : > { %p543_p10 = pneg %p542_p9 }
  0x25   : > { %p550_p12 = pnand %p549_p8, %p543_p10 }
  0x27   : > { %553 = shalt.err (!%p550_p12)
}
  0x28   : > { %460 = dma.hbm_to_vmem [thread:$0]  (!%p757_p11), %s894_s1, 64, %s145_s24, [#allocation7]  }
  0x29   : > { %s27_s11 = sadd.s32 1, %s664_s16  ;;  %s426_s12 = sshll.u32 %s158_s25, 3 }
  0x2a   : > { %p28_p3 = scmp.ge.s32.totalorder %s27_s11, 2  ;;  %s427_s23 = sshll.u32 %s664_s16, 6 }
  0x2b   : > { %s162_s28 = scalar_lea.vmem [#allocation3], %s426_s12  ;;  %s790_s4 = scalar_lea.hbm %s893_s0, %s427_s23 }
  0x2c   : > { %s171_s26 = sshll.u32 %s162_s28, 4  ;;  %s918_s11 = smov (%p28_p3, %s27_s11), 0  ;;  %s792_s26 = int_to_ptr.vmem [resolvable:$true] %s171_s26 }
  0x2d   : > { %s35_s24 = ssub.s32 %s664_s16, %s918_s11  ;;  %s803_s6 = scalar_lea.sflag [#allocation4], %s158_s25 }
  0x2e   : > { %p37_p6 = scmp.eq.s32.totalorder %s35_s24, 0  ;;  %s554_s7 = scalar_lea.hbm %s790_s4, 128 }
  0x2f   : > { %p555_p8 = scmp.ne.s32.totalorder %s790_s4, %s554_s7  ;;  %p907_p11 = scmp.ne.s32.totalorder %s906_s27, 0 }
  0x30   : > { %s799_s5 = scalar_select %p37_p6, %s656_s14, %s39_s19  }
  0x31   : > { %p556_p12 = pneg %p907_p11  ;;  %s559_s10 = scalar_lea.hbm %s893_s0, 256 }
  0x32   : > { %p560_p1 = scmp.lt.u32.totalorder %s790_s4, %s893_s0  ;;  %p561_p2 = scmp.lt.u32.totalorder %s559_s10, %s554_s7 }
  0x33   : > { %p557_p13 = pnand %p556_p12, %p555_p8  ;;  %p563_p4 = scmp.lt.u32.totalorder %s554_s7, %s790_s4 }
  0x34   : > { %p562_p5 = por %p561_p2, %p560_p1 }
  0x35   : > { %p558_p0 = pneg %p557_p13 }
  0x36   : > { %p564_p7 = por %p563_p4, %p562_p5 }
  0x38   : > { %p565_p9 = pnand %p564_p7, %p558_p0 }
  0x3a   : > { %568 = shalt.err (!%p565_p9)
}
  0x3b   : > { %s569_s19 = scalar_lea.vmem %s792_s26, 128  ;;  %s671_s25 = smov [#allocation3]  }
  0x3c   : > { %p570_p10 = scmp.ne.s32.totalorder %s792_s26, %s569_s19  ;;  %s574_s28 = sshll.u32 %s671_s25, 4  ;;  %s575_s28 = int_to_ptr.vmem [resolvable:$false] %s574_s28 }
  0x3d   : > { %s576_s29 = scalar_lea.vmem %s575_s28, 256  ;;  %p577_p8 = scmp.lt.s32.totalorder %s792_s26, %s575_s28 }
  0x3e   : > { %p572_p3 = pnand %p570_p10, %p556_p12  ;;  %p578_p13 = scmp.lt.s32.totalorder %s576_s29, %s569_s19 }
  0x40   : > { %p573_p6 = pneg %p572_p3  ;;  %p579_p1 = por %p578_p13, %p577_p8 }
  0x42   : > { %p580_p2 = pnand %p579_p1, %p573_p6 }
  0x44   : > { %583 = shalt.err (!%p580_p2)
}
  0x45   : > { %s672_s30 = smov 128   ;;  %s673_s24 = smov 64  }
  0x46   : > { %s674_s7 = smov 4   ;;  %p908_p12 = scmp.ne.s32.totalorder %s904_s22, 0 }
  0x47   : > { %464 = dma.hbm_to_vmem [thread:$0]  (!%p907_p11), %s790_s4, 128, %s792_s26, %s803_s6, %s672_s30, %s673_s24, %s674_s7  }
  0x48   : > { %183 = sbr.rel (%p908_p12) target bundleno = 495 (0x1ef), region = 32  ;;  %s185_s8 = sand.u32 (!%p908_p12), 1, %s652_s13  }
  0x49   : > { %s429_s9 = sshll.u32 (!%p908_p12), %s185_s8, 3  ;;  %s186_s10 = scalar_lea.sflag (!%p908_p12), [#allocation4], %s185_s8 }
  0x4a   : > { %s189_s12 = scalar_lea.vmem (!%p908_p12), [#allocation3], %s429_s9  ;;  %p909_p0 = scmp.ne.s32.totalorder (!%p908_p12), %s903_s21, 0 }
  0x4f   : > { %635 = dma.done.wait (%p909_p0), %s186_s10, 128  }
  0x50   : > { %637 = vsyncadd (%p909_p0), %s186_s10, 4294967168  ;;  %p910_p5 = scmp.ne.s32.totalorder %s902_s20, 0 }
  0x52   : > { %639 = dma.done.wait (%p910_p5), [#allocation7], 64  }
  0x53   : > { %641 = vsyncadd (%p910_p5), [#allocation7], 4294967232  ;;  %p431_p11 = scmp.ne.s32.totalorder %s660_s15, 0 }
  0x54   : > { %v675_v0 = vmov (!%p431_p11), 0.0  }
  0x55   : > { %215 = sbr.rel (%p431_p11) target bundleno = 92 (0x5c), region = 44  ;;  %216 = vst [vmem:[#allocation2] sm:$0xf] (!%p431_p11), %v675_v0  ;;  %217 = vst [vmem:[#allocation2 + $0x4] sm:$0xf] (!%p431_p11), %v675_v0 }
  0x5c PF: > { %v218_v1 = vld [vmem:[%s189_s12] sm:$0xf]  ;;  %v220_v2 = vld [vmem:[#allocation2] sm:$0xf]  ;;  %v219_v3 = vld [vmem:[%s189_s12 + $0x4] sm:$0xf] }
  0x5d   : > { %v222_v4 = vadd.f32 %v220_v2, %v218_v1  ;;  %v221_v5 = vld [vmem:[#allocation2 + $0x4] sm:$0xf]  ;;  %p432_p4 = scmp.ne.s32.totalorder %s660_s15, 1 }
  0x5e   : > { %v223_v6 = vadd.f32 %v221_v5, %v219_v3  ;;  %vm232_vm0 = vcmask (!%p432_p4), 1043456   ;;  %v241_v11 = vld [vmem:[#allocation6] sm:$0xf] (!%p432_p4)  ;;  %v676_v12 = vmov (!%p432_p4), 0.0   ;;  %vm677_vm1 = vmmov (!%p432_p4), 0  }
  0x5f   : > { %224 = vst [vmem:[#allocation2] sm:$0xf] %v222_v4  ;;  %229 = sbr.rel (%p432_p4) target bundleno = 470 (0x1d6), region = 48  ;;  %442 = vmatprep.subr.mxu0 (!%p432_p4), %v676_v12  ;;  %444 = vmatprep.mubr.msk.f32.mxu0 (!%p432_p4), %vm677_vm1, %v676_v12  ;;  %v251_v13 = vlaneseq (!%p432_p4)  ;;  %vm261_vm2 = vcmask (!%p432_p4), 1041409   ;;  %vm263_vm3 = vcmask (!%p432_p4), 31744  }
  0x60   : > { %225 = vst [vmem:[#allocation2 + $0x4] sm:$0xf] %v223_v6  ;;  %443 = vmatpush3.msk.msra.mxu0 (!%p432_p4), %vm232_vm0, %v241_v11  ;;  %v433_v24 = vld [vmem:[%s895_s2] ss:$0 sm:$0xff] (!%p432_p4) }
  0x61   : > { %v252_v14 = vand.u32 (!%p432_p4), 127, %v251_v13  ;;  %v254_v15 = vshrl.u32 (!%p432_p4), %v251_v13, 7 }
  0x63   : > { %v255_v17 = vsub.s32 (!%p432_p4), %v252_v14, %v254_v15 }
  0x66   : > { %v230_v7 = vld [vmem:[#allocation2] sm:$0xf] }
  0x67   : > { %v231_v8 = vld [vmem:[#allocation2 + $0x4] sm:$0xf]  ;;  %v233_v9 = vsel %vm232_vm0, %v230_v7, 0.0 }
  0x68   : > { %234 = vadd.xlane.f32.xlu0 %v233_v9  ;;  %v236_v10 = vsel %vm232_vm0, %v231_v8, 0.0 }
  0x6c   : > { %237 = vadd.xlane.f32.xlu0 %v236_v10 }
  0xf5   : > { %v235_v16 = vpop.xlane.xlu0 %234 }
  0xf6   : > { %v239_v18 = vmul.f32 0.00390625, %v235_v16 }
  0xf8   : > { %v256_v21 = vrot.slane %v239_v18, %v255_v17 }
  0xf9   : > { %v238_v19 = vpop.xlane.xlu0 %237 }
  0xfa   : > { %v240_v20 = vmul.f32 0.00390625, %v238_v19 }
  0xfc   : > { %v260_v22 = vrot.slane %v240_v20, %v255_v17 }
  0xfe   : > { %v262_v23 = vsel %vm261_vm2, %v260_v22, %v256_v21 }
  0xff   : > { %445 = vmatmul.mubr.msk.f32.vlgmr.msra.gmra.mrb[0].mxu0 %vm263_vm3, %v262_v23 }
 0x1d2   : > { %v335_v25 = vpop.f32.mrb[0].mxu0 }
 0x1d3   : > { %v336_v26 = vadd.f32 %v433_v24, %v335_v25  ;;  %v446_v27 = vpop.f32.mrb[1].mxu0 }
 0x1d5   : > { %339 = vst [vmem:[#allocation8] sm:$0x3] %v336_v26 }
 0x1d6 PF: > { %p849_p7 = scmp.eq.s32.totalorder %s422_s18, 1  ;;  %s678_s22 = smov [#allocation8]  }
 0x1d7   : > { %s349_s27 = sshll.u32 %s678_s22, 4  ;;  %s350_s27 = int_to_ptr.vmem [resolvable:$true] %s349_s27 }
 0x1d8   : > { %s584_s26 = scalar_lea.vmem %s350_s27, 32  ;;  %p591_p6 = scmp.lt.s32.totalorder %s350_s27, %s350_s27 }
 0x1d9   : > { %p585_p9 = scmp.ne.s32.totalorder %s350_s27, %s584_s26  ;;  %p592_p8 = scmp.lt.s32.totalorder %s584_s26, %s584_s26 }
 0x1db   : > { %p586_p10 = pnand %p585_p9, %p849_p7  ;;  %p593_p13 = por %p592_p8, %p591_p6 }
 0x1dd   : > { %p587_p3 = pneg %p586_p10 }
 0x1df   : > { %p594_p1 = pnand %p593_p13, %p587_p3 }
 0x1e1   : > { %597 = shalt.err (!%p594_p1)
}
 0x1e2   : > { %s598_s18 = scalar_lea.hbm %s896_s3, 32 }
 0x1e3   : > { %p599_p2 = scmp.ne.s32.totalorder %s896_s3, %s598_s18  ;;  %p604_p5 = scmp.lt.u32.totalorder %s598_s18, %s896_s3 }
 0x1e5   : > { %p600_p12 = pnand %p599_p2, %p849_p7 }
 0x1e7   : > { %p601_p0 = pneg %p600_p12 }
 0x1e9   : > { %p606_p11 = pnand %p604_p5, %p601_p0 }
 0x1eb   : > { %609 = shalt.err (!%p606_p11)
}
 0x1ec   : > { %454 = dma.vmem_to_hbm [thread:$0]  (%p849_p7), %s350_s27, 32, %s896_s3, [#allocation5]  }
 0x1ed   : > { %643 = dma.done.wait (%p849_p7), [#allocation5], 32  }
 0x1ee   : > { %645 = vsyncadd (%p849_p7), [#allocation5], 4294967264 }
 0x1ef PF: > { %s18_s17 = sadd.s32 1, %s668_s17   ;;  %s912_s12 = smov %s652_s13 }
 0x1f0   : > { %p15_p4 = scmp.ge.s32.totalorder %s18_s17, 4   ;;  %s913_s13 = smov %s656_s14 }
 0x1f1   : > { %s914_s14 = smov %s799_s5  ;;  %s915_s15 = smov %s664_s16 }
 0x1f2   : > { %s916_s16 = smov %s918_s11  ;;  %17 = sbr.rel (!%p15_p4) target bundleno = 6 (0x6), region = 82 }
 0x1f9   :  { %362 = vsyncpa [#allocation4], 1 }
 0x1fa   :  { %364 = vsyncpa [#allocation4 + $0x1], 1 }
 0x1fb   :  { %365 = vsyncpa [#allocation7], 1 }
 0x1fc   :  { %366 = vsyncpa [#allocation5], 1 }
 0x1fd   :  { %368 = vsyncpa [#allocation5 + $0x1], 1 }

</bundles_post_ra>
